<compile_context>
chip_gen: v5e
topology: v5e:2x2
jax: 0.10.0
libtpu: 0.0.40
codegen_flags: <defaults>
</compile_context>

<pallas_src>
import functools

import jax
import jax.numpy as jnp
from jax.experimental import pallas as pl
from jax.experimental.pallas import tpu as pltpu

LANE = 128


def _round_up(x: int, m: int) -> int:
    return ((x + m - 1) // m) * m


def _sublane(dtype) -> int:
    """Minimum sublane multiple for a dtype (8 f32, 16 bf16, 32 int8/fp8)."""
    return {4: 8, 2: 16, 1: 32}.get(jnp.dtype(dtype).itemsize, 8)


def _pick_tile(total: int, target: int) -> int:
    """Largest 128- (preferably 256-) aligned divisor of `total` <= target.

    `total` is always a multiple of 128 (pre-padded weight dim), so the result
    divides it exactly and no per-call padding of that axis is ever needed.
    """
    target = max(target, LANE)
    best = 0
    for align in (256, 128):
        if total % align:
            continue
        d = align
        while d <= total and d <= target:
            if total % d == 0 and d > best:
                best = d
            d += align
    return best if best else total


def _fc_kernel(x_ref, w_ref, b_ref, o_ref, acc_ref):
    """One (tm, tn) output tile, accumulated over the K (Cin) grid axis."""
    # Fold the bias add into the accumulator init (saves a full (tm, tn) vadd
    # pass in the epilogue).
    @pl.when(pl.program_id(2) == 0)
    def _():
        acc_ref[...] = jnp.broadcast_to(
            b_ref[...].astype(jnp.float32), acc_ref.shape)

    # MXU matmul with f32 accumulation (operands may be f32 or bf16).
    acc_ref[...] += jnp.dot(x_ref[...], w_ref[...],
                            preferred_element_type=jnp.float32)

    # Epilogue: ReLU + store on the last K step.
    @pl.when(pl.program_id(2) == pl.num_programs(2) - 1)
    def _():
        o_ref[...] = jnp.maximum(acc_ref[...], 0.0).astype(o_ref.dtype)


def prepare_fc_params(weight, bias, *, weight_dtype=None):
    """One-time (outside the hot path) layout prep for the FC parameters.

    weight: (Cout, Cin)  -- PyTorch nn.Linear layout.
    bias:   (Cout,)
    Returns:
      w_p: (Cin_p, Cout_p) weight, transposed and zero-padded so both dims are
           multiples of 128 (optionally cast to e.g. bf16 once, here).
      b_p: (1, Cout_p) f32 bias row, zero-padded.
    """
    Cout, Cin = weight.shape
    Cin_p = _round_up(Cin, LANE)
    Cout_p = _round_up(Cout, LANE)
    w_t = weight.T
    if weight_dtype is not None:
        w_t = w_t.astype(weight_dtype)
    w_p = jnp.pad(w_t, ((0, Cin_p - Cin), (0, Cout_p - Cout)))
    b_p = jnp.pad(bias.astype(jnp.float32).reshape(1, Cout),
                  ((0, 0), (0, Cout_p - Cout)))
    return w_p, b_p


@functools.partial(
    jax.jit,
    static_argnames=("out_features", "block_m", "block_n", "block_k",
                     "weight_buffers"))
def fc_forward(x, w_p, b_p, *, out_features, block_m=1024, block_n=512,
               block_k=512, weight_buffers=2):
    """y = relu(x @ W^T + b) with pre-prepared (padded, transposed) params.

    x:   (B, Cin)            f32 or bf16
    w_p: (Cin_p, Cout_p)     from prepare_fc_params (128-aligned dims)
    b_p: (1, Cout_p)         f32, from prepare_fc_params
    out_features: original Cout (static), for the final un-pad slice.
    """
    B, Cin = x.shape
    Cin_p, Cout_p = w_p.shape
    assert Cin_p % LANE == 0 and Cout_p % LANE == 0
    assert Cin <= Cin_p and out_features <= Cout_p
    assert b_p.shape == (1, Cout_p)

    # Match x dtype to the (possibly bf16) stored weight so the MXU runs a
    # single-precision-class matmul; accumulation stays f32 in the kernel.
    if x.dtype != w_p.dtype:
        x = x.astype(w_p.dtype)
    in_b = x.dtype.itemsize
    sub = _sublane(x.dtype)

    # Tile sizes: K/N tiles are exact divisors of the pre-padded weight dims
    # (128/256-aligned); the M tile grows toward block_m, dtype-aware aligned.
    tk = _pick_tile(Cin_p, block_k)
    tn = _pick_tile(Cout_p, block_n)
    tm = min(_round_up(block_m, sub), _round_up(B, sub))

    # Megacore (v7x has 2 TensorCores): ensure >= 2 blocks across the parallel
    # (M, N) grid axes when the layer allows it.
    if (_round_up(B, tm) // tm) * (Cout_p // tn) < 2:
        tn_half = _pick_tile(Cout_p, max(tn // 2, LANE))
        if tn_half < tn:
            tn = tn_half
        elif tm > sub:
            tm = _round_up(max(tm // 2, sub), sub)

    # Keep the tile plan comfortably inside v7x's 64 MiB physical VMEM.
    def footprint(tm_, tn_, tk_):
        return (2 * tm_ * tk_ * in_b                  # x tile (double-buffered)
                + weight_buffers * tk_ * tn_ * in_b   # weight tiles
                + 2 * tn_ * 4                         # bias row
                + 2 * tm_ * tn_ * in_b                # output tile
                + tm_ * tn_ * 4)                      # f32 accumulator

    budget = 40 << 20
    fp = footprint(tm, tn, tk)
    while fp > budget and tm > sub:
        tm = _round_up(max(tm // 2, sub), sub)
        fp = footprint(tm, tn, tk)
    while fp > budget:
        tn_next = _pick_tile(Cout_p, max(tn // 2, LANE))
        if tn_next >= tn:
            break
        tn = tn_next
        fp = footprint(tm, tn, tk)

    # Only the activation is padded per call (cheap: B x Cin); the weight is
    # already padded once at prep time.  Zero padding is exact for the matmul.
    B_p = _round_up(B, tm)
    if B_p != B or Cin_p != Cin:
        x = jnp.pad(x, ((0, B_p - B), (0, Cin_p - Cin)))

    grid = (B_p // tm, Cout_p // tn, Cin_p // tk)
    m_blocks, n_blocks, _ = grid

    vmem_limit = min(max(int(1.5 * fp) + (4 << 20), 16 << 20), 48 << 20)

    # Optional deeper buffering of the weight stream (mem-bound v5e layers).
    w_spec_kwargs = {}
    if weight_buffers != 2:
        w_spec_kwargs["pipeline_mode"] = pl.Buffered(weight_buffers)
    w_spec = pl.BlockSpec((tk, tn), lambda i, j, k: (k, j), **w_spec_kwargs)

    # Bytes reflect actual re-reads with this grid order: the weight is
    # streamed once per M block, x once per N block.
    cost = pl.CostEstimate(
        flops=2 * B_p * Cin_p * Cout_p,
        transcendentals=0,
        bytes_accessed=(Cin_p * Cout_p * in_b * m_blocks
                        + B_p * Cin_p * in_b * n_blocks
                        + B_p * Cout_p * in_b
                        + Cout_p * 4 * m_blocks * n_blocks),
    )

    out_p = pl.pallas_call(
        _fc_kernel,
        out_shape=jax.ShapeDtypeStruct((B_p, Cout_p), x.dtype),
        grid_spec=pltpu.PrefetchScalarGridSpec(
            num_scalar_prefetch=0,
            grid=grid,
            in_specs=[
                pl.BlockSpec((tm, tk), lambda i, j, k: (i, k)),   # x tile
                w_spec,                                           # weight tile
                pl.BlockSpec((1, tn), lambda i, j, k: (0, j)),    # bias row
            ],
            out_specs=pl.BlockSpec((tm, tn), lambda i, j, k: (i, j)),
            scratch_shapes=[pltpu.VMEM((tm, tn), jnp.float32)],
        ),
        compiler_params=pltpu.CompilerParams(
            dimension_semantics=("parallel", "parallel", "arbitrary"),
            vmem_limit_bytes=vmem_limit,
        ),
        cost_estimate=cost,
    )(x, w_p, b_p)

    # No-op when B and Cout are already tile-aligned (common FC widths).
    return out_p[:B, :out_features]


def init_fc_params(key, in_channels, out_channels, dtype=jnp.float32):
    """Deterministic init matching nn.Linear's U(-1/sqrt(in), 1/sqrt(in)).

    Returns weight in PyTorch layout (out, in) and bias (out,).
    """
    kw, kb = jax.random.split(key)
    bound = 1.0 / (in_channels ** 0.5)
    w = jax.random.uniform(kw, (out_channels, in_channels), dtype,
                           minval=-bound, maxval=bound)
    b = jax.random.uniform(kb, (out_channels,), jnp.float32,
                           minval=-bound, maxval=bound)
    return w, b


if __name__ == "__main__":
    key = jax.random.PRNGKey(0)
    k1, k2, k3, k4 = jax.random.split(key, 4)

    # 1) Small demo shapes (below one tile: exercises M/K/N padding done once
    #    at prep time plus a single-step grid).
    B, Cin, Cout = 8, 32, 64
    x = jax.random.normal(k1, (B, Cin), jnp.float32)
    w, b = init_fc_params(k2, Cin, Cout)
    w_p, b_p = prepare_fc_params(w, b)
    out = jax.block_until_ready(fc_forward(x, w_p, b_p, out_features=Cout))
    ref = jnp.maximum(
        jnp.dot(x, w.T, preferred_element_type=jnp.float32) + b, 0.0)
    assert out.shape == (B, Cout)
    assert jnp.allclose(out, ref, atol=1e-3, rtol=1e-3)

    # 2) Multi-tile shapes with small blocks: exercises all three grid axes
    #    (M parallel, N parallel, K reduction through the f32 accumulator).
    B2, Cin2, Cout2 = 128, 256, 256
    x2 = jax.random.normal(k3, (B2, Cin2), jnp.float32)
    w2, b2 = init_fc_params(k4, Cin2, Cout2)
    w2_p, b2_p = prepare_fc_params(w2, b2)
    out2 = jax.block_until_ready(
        fc_forward(x2, w2_p, b2_p, out_features=Cout2,
                   block_m=64, block_n=128, block_k=128))
    ref2 = jnp.maximum(
        jnp.dot(x2, w2.T, preferred_element_type=jnp.float32) + b2, 0.0)
    assert out2.shape == (B2, Cout2)
    assert jnp.allclose(out2, ref2, atol=2e-3, rtol=2e-3)

    # 3) bf16 weights cast once at prep time (recommended on v6e/v7x);
    #    bias and accumulation stay f32; 16-sublane-aligned M tiles.
    w2_bf, b2_bf = prepare_fc_params(w2, b2, weight_dtype=jnp.bfloat16)
    out3 = jax.block_until_ready(
        fc_forward(x2.astype(jnp.bfloat16), w2_bf, b2_bf, out_features=Cout2))
    assert jnp.allclose(out3.astype(jnp.float32), ref2, atol=1e-1, rtol=1e-1)

    print("KERNEL_OK")
</pallas_src>

<mosaic_0001>
module attributes {stable_mosaic.version = 11 : i64} {
  func.func @_fc_kernel(%arg0: i32, %arg1: i32, %arg2: i32, %arg3: memref<8x128xf32, #tpu.memory_space<vmem>>, %arg4: memref<128x128xf32, #tpu.memory_space<vmem>>, %arg5: memref<1x128xf32, #tpu.memory_space<vmem>>, %arg6: memref<8x128xf32, #tpu.memory_space<vmem>>, %arg7: memref<8x128xf32, #tpu.memory_space<vmem>>) attributes {dimension_semantics = [#tpu.dimension_semantics<parallel>, #tpu.dimension_semantics<parallel>, #tpu.dimension_semantics<arbitrary>], iteration_bounds = array<i64: 1, 1, 1>, scalar_prefetch = 0 : i64, scratch_operands = 1 : i64, tpu.core_type = #tpu.core_type<tc>, window_params = [{transform_indices = @transform_0, window_bounds = array<i64: 8, 128>}, {transform_indices = @transform_1, window_bounds = array<i64: 128, 128>}, {transform_indices = @transform_2, window_bounds = array<i64: 1, 128>}, {transform_indices = @transform_3, window_bounds = array<i64: 8, 128>}]} {
    %c0_i32 = arith.constant 0 : i32
    %0 = arith.cmpi eq, %arg2, %c0_i32 : i32
    %1 = arith.extui %0 : i1 to i32
    %c0_i32_0 = arith.constant 0 : i32
    %2 = arith.cmpi ne, %1, %c0_i32_0 : i32
    scf.if %2 {
      %c0_10 = arith.constant 0 : index
      %c0_11 = arith.constant 0 : index
      %12 = vector.load %arg5[%c0_10, %c0_11] : memref<1x128xf32, #tpu.memory_space<vmem>>, vector<1x128xf32>
      %13 = vector.shape_cast %12 : vector<1x128xf32> to vector<1x128xf32>
      %14 = vector.broadcast %13 : vector<1x128xf32> to vector<8x128xf32>
      %c0_12 = arith.constant 0 : index
      %c0_13 = arith.constant 0 : index
      %15 = vector.load %arg7[%c0_12, %c0_13] : memref<8x128xf32, #tpu.memory_space<vmem>>, vector<8x128xf32>
      tpu.vector_store %arg7[%c0_12, %c0_13], %14 {strides = array<i32>} : memref<8x128xf32, #tpu.memory_space<vmem>>, vector<8x128xf32>,
    } else {
    }
    %c0 = arith.constant 0 : index
    %c0_1 = arith.constant 0 : index
    %3 = vector.load %arg7[%c0, %c0_1] : memref<8x128xf32, #tpu.memory_space<vmem>>, vector<8x128xf32>
    %c0_2 = arith.constant 0 : index
    %c0_3 = arith.constant 0 : index
    %4 = vector.load %arg3[%c0_2, %c0_3] : memref<8x128xf32, #tpu.memory_space<vmem>>, vector<8x128xf32>
    %c0_4 = arith.constant 0 : index
    %c0_5 = arith.constant 0 : index
    %5 = vector.load %arg4[%c0_4, %c0_5] : memref<128x128xf32, #tpu.memory_space<vmem>>, vector<128x128xf32>
    %cst = arith.constant dense<0.000000e+00> : vector<8x128xf32>
    %6 = tpu.matmul %4, %5, %cst {dimension_numbers = #tpu.dot_dimension_numbers<[1], [0], [0], [1], [0, 0, 1, 1], [], []>} : vector<8x128xf32>, vector<128x128xf32>, vector<8x128xf32> -> vector<8x128xf32>
    %7 = arith.addf %3, %6 : vector<8x128xf32>
    %c0_6 = arith.constant 0 : index
    %c0_7 = arith.constant 0 : index
    %8 = vector.load %arg7[%c0_6, %c0_7] : memref<8x128xf32, #tpu.memory_space<vmem>>, vector<8x128xf32>
    tpu.vector_store %arg7[%c0_6, %c0_7], %7 {strides = array<i32>} : memref<8x128xf32, #tpu.memory_space<vmem>>, vector<8x128xf32>,
    %c0_i32_8 = arith.constant 0 : i32
    %9 = arith.cmpi eq, %arg2, %c0_i32_8 : i32
    %10 = arith.extui %9 : i1 to i32
    %c0_i32_9 = arith.constant 0 : i32
    %11 = arith.cmpi ne, %10, %c0_i32_9 : i32
    scf.if %11 {
      %c0_10 = arith.constant 0 : index
      %c0_11 = arith.constant 0 : index
      %12 = vector.load %arg7[%c0_10, %c0_11] : memref<8x128xf32, #tpu.memory_space<vmem>>, vector<8x128xf32>
      %cst_12 = arith.constant 0.000000e+00 : f32
      %13 = vector.broadcast %cst_12 : f32 to vector<8x128xf32>
      %14 = arith.maximumf %12, %13 : vector<8x128xf32>
      %c0_13 = arith.constant 0 : index
      %c0_14 = arith.constant 0 : index
      %15 = vector.load %arg6[%c0_13, %c0_14] : memref<8x128xf32, #tpu.memory_space<vmem>>, vector<8x128xf32>
      tpu.vector_store %arg6[%c0_13, %c0_14], %14 {strides = array<i32>} : memref<8x128xf32, #tpu.memory_space<vmem>>, vector<8x128xf32>,
    } else {
    }
    return
  }
  func.func @transform_0(%arg0: i32, %arg1: i32, %arg2: i32) -> (i32, i32) {
    %c0_i32 = arith.constant 0 : i32
    return %arg0, %arg2 : i32, i32
  }
  func.func @transform_1(%arg0: i32, %arg1: i32, %arg2: i32) -> (i32, i32) {
    %c0_i32 = arith.constant 0 : i32
    return %arg2, %arg1 : i32, i32
  }
  func.func @transform_2(%arg0: i32, %arg1: i32, %arg2: i32) -> (i32, i32) {
    %c0_i32 = arith.constant 0 : i32
    %c0_i32_0 = arith.constant 0 : i32
    return %c0_i32, %arg1 : i32, i32
  }
  func.func @transform_3(%arg0: i32, %arg1: i32, %arg2: i32) -> (i32, i32) {
    %c0_i32 = arith.constant 0 : i32
    return %arg0, %arg1 : i32, i32
  }
}

</mosaic_0001>

<bundles_post_ra>
// kernel: fc_forward.1
= control target key start
LH: loop header
LB: loop body
LE: loop exit
PB: predicated region body
PF: predicated region fallthrough
CT: control target
= control target key end

     0   :  { %8 = vsyncpa [#allocation4], 0  ;;  %s196_s0 = inlined_call_operand.vmem [shape: f32[8,128], index: 0, kind: input, shape index: {}]   ;;  %s197_s1 = inlined_call_operand.hbm [shape: f32[128,128], index: 1, kind: input, shape index: {}]   ;;  %s198_s2 = inlined_call_operand.vmem [shape: f32[1,128], index: 2, kind: input, shape index: {}]   ;;  %s199_s3 = inlined_call_operand.hbm [shape: f32[8,128], index: 3, kind: output, shape index: {}]  }
   0x1   :  { %9 = vsyncpa [#allocation5], 0  ;;  %s16_s14 = sshll.u32 %s197_s1, 4  ;;  %s160_s15 = smov [#allocation3]   ;;  %s17_s14 = int_to_ptr.hbm [resolvable:$true] %s16_s14 }
   0x2   :  { %s18_s16 = sshll.u32 %s160_s15, 4  ;;  %s161_s17 = smov 128   ;;  %s19_s16 = int_to_ptr.vmem [resolvable:$true] %s18_s16 }
   0x3   :  { %s162_s18 = smov 8  }
   0x4   :  { %24 = dma.hbm_to_vmem [thread:$0]  %s17_s14, 2048, %s19_s16, [#allocation4], %s161_s17, %s161_s17, %s162_s18  }
   0x5   :  { %156 = dma.done.wait [#allocation4], 2048  }
   0x6   :  { %157 = vsyncadd [#allocation4], 4294965248  ;;  %v57_v0 = vld [vmem:[#allocation3 + $0x78] sm:$0xff]  ;;  %v56_v1 = vld [vmem:[#allocation3 + $0x70] sm:$0xff]  ;;  %s163_s22 = smov [#allocation6]   ;;  %s93_s26 = sshll.u32 %s199_s3, 4  ;;  %s94_s26 = int_to_ptr.hbm [resolvable:$true] %s93_s26 }
   0x7   :  { %58 = vmatpush.msra.mxu0 %v57_v0  ;;  %v55_v2 = vld [vmem:[#allocation3 + $0x68] sm:$0xff]  ;;  %v54_v3 = vld [vmem:[#allocation3 + $0x60] sm:$0xff]  ;;  %v53_v4 = vld [vmem:[#allocation3 + $0x58] sm:$0xff]  ;;  %s91_s23 = sshll.u32 %s163_s22, 4  ;;  %s92_s23 = int_to_ptr.vmem [resolvable:$true] %s91_s23 }
   0x8   :  { %v52_v5 = vld [vmem:[#allocation3 + $0x50] sm:$0xff]  ;;  %v51_v6 = vld [vmem:[#allocation3 + $0x48] sm:$0xff]  ;;  %v50_v7 = vld [vmem:[#allocation3 + $0x40] sm:$0xff] }
   0x9   :  { %59 = vmatpush.msra.mxu0 %v56_v1  ;;  %v49_v8 = vld [vmem:[#allocation3 + $0x38] sm:$0xff]  ;;  %v48_v9 = vld [vmem:[#allocation3 + $0x30] sm:$0xff]  ;;  %v47_v10 = vld [vmem:[#allocation3 + $0x28] sm:$0xff] }
   0xa   :  { %v46_v11 = vld [vmem:[#allocation3 + $0x20] sm:$0xff]  ;;  %v45_v12 = vld [vmem:[#allocation3 + $0x18] sm:$0xff]  ;;  %v44_v13 = vld [vmem:[#allocation3 + $0x10] sm:$0xff] }
   0xb   :  { %60 = vmatpush.msra.mxu0 %v55_v2  ;;  %v43_v14 = vld [vmem:[#allocation3 + $0x8] sm:$0xff]  ;;  %v42_v15 = vld [vmem:[#allocation3] sm:$0xff] }
   0xc   :  { %v41_v16 = vld [vmem:[%s196_s0] sm:$0xff] }
   0xd   :  { %61 = vmatpush.msra.mxu0 %v54_v3  ;;  %v107_v17 = vld [vmem:[%s198_s2] ss:$0 sm:$0xff] }
   0xf   :  { %62 = vmatpush.msra.mxu0 %v53_v4 }
  0x11   :  { %63 = vmatpush.msra.mxu0 %v52_v5 }
  0x13   :  { %64 = vmatpush.msra.mxu0 %v51_v6 }
  0x15   :  { %65 = vmatpush.msra.mxu0 %v50_v7 }
  0x17   :  { %66 = vmatpush.msra.mxu0 %v49_v8 }
  0x19   :  { %67 = vmatpush.msra.mxu0 %v48_v9 }
  0x1b   :  { %68 = vmatpush.msra.mxu0 %v47_v10 }
  0x1d   :  { %69 = vmatpush.msra.mxu0 %v46_v11 }
  0x1f   :  { %70 = vmatpush.msra.mxu0 %v45_v12 }
  0x21   :  { %71 = vmatpush.msra.mxu0 %v44_v13 }
  0x23   :  { %72 = vmatpush.msra.mxu0 %v43_v14 }
  0x25   :  { %73 = vmatpush.msra.mxu0 %v42_v15 }
  0x26   :  { %74 = vmatmul.f32.vlgmr.msra.gmra.mxu0 %v41_v16 }
  0xa3   :  { %v75_v18 = vpop.f32.mrf.mxu0 }
  0xa4   :  { %v78_v19 = vadd.f32 %v107_v17, %v75_v18 }
  0xa6   :  { %v84_v20 = vmax.f32 %v78_v19, 0.0 }
  0xa8   :  { %85 = vst [vmem:[#allocation6] sm:$0xff] %v84_v20 }
  0xa9   :  { %96 = dma.vmem_to_hbm [thread:$0]  %s92_s23, 128, %s94_s26, [#allocation5]  }
  0xaa   :  { %158 = dma.done.wait [#allocation5], 128  }
  0xab   :  { %159 = vsyncadd [#allocation5], 4294967168 }
  0xac   :  { %101 = vsyncpa [#allocation4], 1 }
  0xad   :  { %102 = vsyncpa [#allocation5], 1 }

</bundles_post_ra>
